<compile_context>
chip_gen: v7x
topology: tpu7x:2x2x1
jax: 0.10.0
libtpu: 0.0.40
codegen_flags: <defaults>
</compile_context>

<pallas_src>
import math
from functools import partial

import jax
import jax.numpy as jnp
from jax.experimental import pallas as pl
from jax.experimental.pallas import tpu as pltpu

_LANE = 128
_SUBLANE = 8
_MIB = 1024 * 1024


def _round_up(x, m):
    return ((x + m - 1) // m) * m


def _vmem_capacity_bytes():
    """Physical VMEM per TensorCore; falls back to the v7x value (64 MiB),
    the smallest across supported generations."""
    try:
        return int(pltpu.get_tpu_info().vmem_capacity_bytes)
    except Exception:
        return 64 * _MIB


def _cdefunc_kernel(z_ref, w1_ref, b1_ref, w2_ref, b2_ref, out_ref, *,
                    precision):
    # matmul -> relu -> matmul -> tanh (MXU / VPU / EUP) for one batch tile.
    z = z_ref[...]                                               # (TB, H)
    h = jnp.dot(z, w1_ref[...], preferred_element_type=jnp.float32,
                precision=precision)
    h = jnp.maximum(h + b1_ref[...], 0.0)                        # (TB, hid_p)
    o = jnp.dot(h, w2_ref[...], preferred_element_type=jnp.float32,
                precision=precision)
    o = o + b2_ref[...]                                          # (TB, out_p)
    # TODO(synk): if the surrounding neural-CDE solve immediately contracts
    # f(z) with dX/dt, fuse that (B,H,I)x(B,I) contraction here to cut the
    # dominant HBM writes by a factor of I (write-bound kernel).
    out_ref[...] = jnp.tanh(o).astype(out_ref.dtype)


def prepare_params(params, input_channels, hidden_channels):
    """One-time conversion of torch-layout params into kernel layout.

    Hoists per-call transposes / reshapes out of the forward path, pads the
    hidden width (10 -> 128) and the output feature dim (I*H -> multiple of
    128) with zeros.  Zero hidden columns survive bias+ReLU as exact zeros
    and hit zero rows of w2, so results are unchanged while the intermediate
    and the output stores become (8,128)-tile aligned and lane-dense.
    """
    w1, b1, w2, b2 = params
    hid = w1.shape[0]                          # 10
    hid_p = _round_up(hid, _LANE)              # -> 128
    out_dim = input_channels * hidden_channels
    out_dim_p = _round_up(out_dim, _LANE)

    w1_t = jnp.asarray(w1, jnp.float32).T                 # (H, hid)
    b1_2d = jnp.asarray(b1, jnp.float32).reshape(1, -1)   # (1, hid)
    w2_t = jnp.asarray(w2, jnp.float32).T                 # (hid, out)
    b2_2d = jnp.asarray(b2, jnp.float32).reshape(1, -1)   # (1, out)

    if hid_p != hid:
        w1_t = jnp.pad(w1_t, ((0, 0), (0, hid_p - hid)))
        b1_2d = jnp.pad(b1_2d, ((0, 0), (0, hid_p - hid)))
        w2_t = jnp.pad(w2_t, ((0, hid_p - hid), (0, 0)))
    if out_dim_p != out_dim:
        w2_t = jnp.pad(w2_t, ((0, 0), (0, out_dim_p - out_dim)))
        b2_2d = jnp.pad(b2_2d, ((0, 0), (0, out_dim_p - out_dim)))
    return (w1_t, b1_2d, w2_t, b2_2d)


def _choose_tiling(B, hidden, hid_p, out_dim_p, out_itemsize,
                   vmem_budget, target_grid_steps):
    """Pick (batch tile rows, grid steps) with bounded padding waste."""
    # Per-row VMEM footprint: double-buffered pipelined z / out tiles plus
    # single-buffered f32 compute intermediates (h and pre-tanh o).
    pipelined = 4 * hidden + out_itemsize * out_dim_p
    scratch = 4 * hid_p + 4 * out_dim_p
    tb_cap = max(_SUBLANE,
                 (vmem_budget // (2 * pipelined + scratch))
                 // _SUBLANE * _SUBLANE)
    # Grid steps: respect the VMEM cap and (when B is big enough) use at
    # least `target_grid_steps` so both v7x TensorCores get work and the
    # BlockSpec pipeline has something to overlap.
    grid = max(pl.cdiv(B, tb_cap),
               min(target_grid_steps, pl.cdiv(B, _SUBLANE)))
    tb = _round_up(pl.cdiv(B, grid), _SUBLANE)
    grid = pl.cdiv(B, tb)
    return tb, grid


def cdefunc_forward(t, z, prepared_params, input_channels, hidden_channels,
                    *, out_dtype=jnp.float32, block_batch=None,
                    target_grid_steps=4, precision=None):
    """JAX equivalent of CDEFunc.forward(t, z).

    z: (B, hidden_channels) float32
    prepared_params: output of prepare_params() (kernel layout, built once)
    returns: (B, hidden_channels, input_channels) in `out_dtype`
             (pass out_dtype=jnp.bfloat16 to halve output HBM traffic if the
              ODE solver tolerates it; default keeps float32 module semantics)
    """
    del t  # unused, matches the PyTorch module
    w1_t, b1_2d, w2_t, b2_2d = prepared_params
    B, H = z.shape
    assert H == hidden_channels, (H, hidden_channels)
    out_dim = input_channels * hidden_channels
    hid_p = w2_t.shape[0]
    out_dim_p = w2_t.shape[1]
    out_itemsize = jnp.dtype(out_dtype).itemsize

    # Per-generation VMEM budget: v5e/v6e have 128 MiB per TC, v7x only 64.
    vmem_cap = _vmem_capacity_bytes()
    if vmem_cap >= 96 * _MIB:            # v5e / v6e
        budget, vmem_limit = 28 * _MIB, 64 * _MIB
    else:                                # v7x
        budget, vmem_limit = 12 * _MIB, 32 * _MIB

    if block_batch is None:
        tb, grid_b = _choose_tiling(max(B, 1), H, hid_p, out_dim_p,
                                    out_itemsize, budget, target_grid_steps)
    else:
        tb = _round_up(block_batch, _SUBLANE)
        grid_b = pl.cdiv(max(B, 1), tb)

    B_p = grid_b * tb
    z_p = z if B_p == B else jnp.pad(z, ((0, B_p - B), (0, 0)))

    out = pl.pallas_call(
        partial(_cdefunc_kernel, precision=precision),
        out_shape=jax.ShapeDtypeStruct((B_p, out_dim_p), out_dtype),
        grid=(grid_b,),
        in_specs=[
            pl.BlockSpec((tb, H), lambda i: (i, 0)),          # z tile (pipelined)
            pl.BlockSpec(w1_t.shape, lambda i: (0, 0)),        # weights stay
            pl.BlockSpec(b1_2d.shape, lambda i: (0, 0)),       # VMEM-resident
            pl.BlockSpec(w2_t.shape, lambda i: (0, 0)),        # across the
            pl.BlockSpec(b2_2d.shape, lambda i: (0, 0)),       # whole grid
        ],
        out_specs=pl.BlockSpec((tb, out_dim_p), lambda i: (i, 0)),
        compiler_params=pltpu.CompilerParams(
            # Batch axis is embarrassingly parallel; on v7x this lets the
            # runtime split grid steps across both TensorCores.
            dimension_semantics=("parallel",),
            vmem_limit_bytes=vmem_limit,
        ),
    )(z_p, w1_t, b1_2d, w2_t, b2_2d)

    # Strip padding only when it exists: no post-kernel copy in the common
    # (B % 8 == 0, I*H % 128 == 0) case.  Padded batch rows hold tanh(bias),
    # which is why this row slice must stay if batch padding happened.
    if B_p != B:
        out = out[:B]
    if out_dim_p != out_dim:
        out = out[:, :out_dim]
    # z.view(B, hidden_channels, input_channels)
    return out.reshape(B, hidden_channels, input_channels)


def init_params(key, input_channels, hidden_channels):
    """Deterministic init mirroring torch.nn.Linear defaults
    (uniform(-1/sqrt(fan_in), 1/sqrt(fan_in)))."""
    k1, k2, k3, k4 = jax.random.split(key, 4)
    bound1 = 1.0 / math.sqrt(hidden_channels)
    w1 = jax.random.uniform(k1, (10, hidden_channels), jnp.float32,
                            -bound1, bound1)
    b1 = jax.random.uniform(k2, (10,), jnp.float32, -bound1, bound1)
    bound2 = 1.0 / math.sqrt(10.0)
    w2 = jax.random.uniform(k3, (input_channels * hidden_channels, 10),
                            jnp.float32, -bound2, bound2)
    b2 = jax.random.uniform(k4, (input_channels * hidden_channels,),
                            jnp.float32, -bound2, bound2)
    return (w1, b1, w2, b2)


def _reference_forward(t, z, params, input_channels, hidden_channels):
    """Pure-JAX reference for correctness checking."""
    del t
    w1, b1, w2, b2 = params
    h = jnp.maximum(jnp.dot(z, w1.T) + b1, 0.0)
    o = jnp.tanh(jnp.dot(h, w2.T) + b2)
    return o.reshape(z.shape[0], hidden_channels, input_channels)


if __name__ == "__main__":
    input_channels = 4
    hidden_channels = 32

    key = jax.random.PRNGKey(0)
    k_params, k_z1, k_z2 = jax.random.split(key, 3)
    params = init_params(k_params, input_channels, hidden_channels)
    # One-time param prep (hoisted out of the ODE-solver hot loop).
    prepared = prepare_params(params, input_channels, hidden_channels)
    t = jnp.float32(0.0)  # unused by the module

    # Small, module-consistent shape.
    z = jax.random.normal(k_z1, (8, hidden_channels), jnp.float32)
    out = jax.block_until_ready(
        cdefunc_forward(t, z, prepared, input_channels, hidden_channels))
    ref = _reference_forward(t, z, params, input_channels, hidden_channels)
    assert out.shape == (8, hidden_channels, input_channels), out.shape
    assert jnp.allclose(out, ref, atol=2e-5, rtol=2e-5), "mismatch (B=8)"

    # Non-tile-aligned batch: exercises the multi-step grid, bounded batch
    # padding and the row-unpad path.
    z2 = jax.random.normal(k_z2, (300, hidden_channels), jnp.float32)
    out2 = jax.block_until_ready(
        cdefunc_forward(t, z2, prepared, input_channels, hidden_channels))
    ref2 = _reference_forward(t, z2, params, input_channels, hidden_channels)
    assert out2.shape == (300, hidden_channels, input_channels), out2.shape
    assert jnp.allclose(out2, ref2, atol=2e-5, rtol=2e-5), "mismatch (B=300)"

    print("KERNEL_OK")
</pallas_src>

<mosaic_0001>
module attributes {stable_mosaic.version = 11 : i64} {
  func.func @_cdefunc_kernel(%arg0: i32, %arg1: memref<8x32xf32, #tpu.memory_space<vmem>>, %arg2: memref<32x128xf32, #tpu.memory_space<vmem>>, %arg3: memref<1x128xf32, #tpu.memory_space<vmem>>, %arg4: memref<128x128xf32, #tpu.memory_space<vmem>>, %arg5: memref<1x128xf32, #tpu.memory_space<vmem>>, %arg6: memref<8x128xf32, #tpu.memory_space<vmem>>) attributes {dimension_semantics = [#tpu.dimension_semantics<parallel>], iteration_bounds = array<i64: 1>, scalar_prefetch = 0 : i64, scratch_operands = 0 : i64, tpu.core_type = #tpu.core_type<tc>, window_params = [{transform_indices = @transform_0, window_bounds = array<i64: 8, 32>}, {pipeline_mode = #tpu.pipeline_mode<synchronous>, transform_indices = @transform_1, window_bounds = array<i64: 32, 128>}, {pipeline_mode = #tpu.pipeline_mode<synchronous>, transform_indices = @transform_2, window_bounds = array<i64: 1, 128>}, {pipeline_mode = #tpu.pipeline_mode<synchronous>, transform_indices = @transform_3, window_bounds = array<i64: 128, 128>}, {pipeline_mode = #tpu.pipeline_mode<synchronous>, transform_indices = @transform_4, window_bounds = array<i64: 1, 128>}, {transform_indices = @transform_5, window_bounds = array<i64: 8, 128>}]} {
    %c0 = arith.constant 0 : index
    %c0_0 = arith.constant 0 : index
    %0 = vector.load %arg1[%c0, %c0_0] : memref<8x32xf32, #tpu.memory_space<vmem>>, vector<8x32xf32>
    %c0_1 = arith.constant 0 : index
    %c0_2 = arith.constant 0 : index
    %1 = vector.load %arg2[%c0_1, %c0_2] : memref<32x128xf32, #tpu.memory_space<vmem>>, vector<32x128xf32>
    %cst = arith.constant dense<0.000000e+00> : vector<8x128xf32>
    %2 = tpu.matmul %0, %1, %cst {dimension_numbers = #tpu.dot_dimension_numbers<[1], [0], [0], [1], [0, 0, 1, 1], [], []>} : vector<8x32xf32>, vector<32x128xf32>, vector<8x128xf32> -> vector<8x128xf32>
    %c0_3 = arith.constant 0 : index
    %c0_4 = arith.constant 0 : index
    %3 = vector.load %arg3[%c0_3, %c0_4] : memref<1x128xf32, #tpu.memory_space<vmem>>, vector<1x128xf32>
    %4 = vector.broadcast %3 : vector<1x128xf32> to vector<8x128xf32>
    %5 = arith.addf %2, %4 : vector<8x128xf32>
    %cst_5 = arith.constant 0.000000e+00 : f32
    %6 = vector.broadcast %cst_5 : f32 to vector<8x128xf32>
    %7 = arith.maximumf %5, %6 : vector<8x128xf32>
    %c0_6 = arith.constant 0 : index
    %c0_7 = arith.constant 0 : index
    %8 = vector.load %arg4[%c0_6, %c0_7] : memref<128x128xf32, #tpu.memory_space<vmem>>, vector<128x128xf32>
    %cst_8 = arith.constant dense<0.000000e+00> : vector<8x128xf32>
    %9 = tpu.matmul %7, %8, %cst_8 {dimension_numbers = #tpu.dot_dimension_numbers<[1], [0], [0], [1], [0, 0, 1, 1], [], []>} : vector<8x128xf32>, vector<128x128xf32>, vector<8x128xf32> -> vector<8x128xf32>
    %c0_9 = arith.constant 0 : index
    %c0_10 = arith.constant 0 : index
    %10 = vector.load %arg5[%c0_9, %c0_10] : memref<1x128xf32, #tpu.memory_space<vmem>>, vector<1x128xf32>
    %11 = vector.broadcast %10 : vector<1x128xf32> to vector<8x128xf32>
    %12 = arith.addf %9, %11 : vector<8x128xf32>
    %13 = math.tanh %12 : vector<8x128xf32>
    %c0_11 = arith.constant 0 : index
    %c0_12 = arith.constant 0 : index
    %14 = vector.load %arg6[%c0_11, %c0_12] : memref<8x128xf32, #tpu.memory_space<vmem>>, vector<8x128xf32>
    tpu.vector_store %arg6[%c0_11, %c0_12], %13 {strides = array<i32>} : memref<8x128xf32, #tpu.memory_space<vmem>>, vector<8x128xf32>,
    return
  }
  func.func @transform_0(%arg0: i32) -> (i32, i32) {
    %c0_i32 = arith.constant 0 : i32
    %c0_i32_0 = arith.constant 0 : i32
    return %arg0, %c0_i32 : i32, i32
  }
  func.func @transform_1(%arg0: i32) -> (i32, i32) {
    %c0_i32 = arith.constant 0 : i32
    %c0_i32_0 = arith.constant 0 : i32
    %c0_i32_1 = arith.constant 0 : i32
    return %c0_i32, %c0_i32_0 : i32, i32
  }
  func.func @transform_2(%arg0: i32) -> (i32, i32) {
    %c0_i32 = arith.constant 0 : i32
    %c0_i32_0 = arith.constant 0 : i32
    %c0_i32_1 = arith.constant 0 : i32
    return %c0_i32, %c0_i32_0 : i32, i32
  }
  func.func @transform_3(%arg0: i32) -> (i32, i32) {
    %c0_i32 = arith.constant 0 : i32
    %c0_i32_0 = arith.constant 0 : i32
    %c0_i32_1 = arith.constant 0 : i32
    return %c0_i32, %c0_i32_0 : i32, i32
  }
  func.func @transform_4(%arg0: i32) -> (i32, i32) {
    %c0_i32 = arith.constant 0 : i32
    %c0_i32_0 = arith.constant 0 : i32
    %c0_i32_1 = arith.constant 0 : i32
    return %c0_i32, %c0_i32_0 : i32, i32
  }
  func.func @transform_5(%arg0: i32) -> (i32, i32) {
    %c0_i32 = arith.constant 0 : i32
    %c0_i32_0 = arith.constant 0 : i32
    return %arg0, %c0_i32 : i32, i32
  }
}

</mosaic_0001>

<bundles_post_ra>
// kernel: tpu_custom_call.1
= control target key start
LH: loop header
LB: loop body
LE: loop exit
PB: predicated region body
PF: predicated region fallthrough
CT: control target
= control target key end

     0   :  { %10 = vsyncpa [#allocation3], 0  ;;  %s563_s0 = inlined_call_operand.hbm [shape: f32[8,32], index: 0, kind: input, shape index: {}]   ;;  %s564_s1 = inlined_call_operand.hbm [shape: f32[32,128], index: 1, kind: input, shape index: {}]   ;;  %s565_s2 = inlined_call_operand.vmem [shape: f32[1,128], index: 2, kind: input, shape index: {}]   ;;  %s566_s3 = inlined_call_operand.hbm [shape: f32[128,128], index: 3, kind: input, shape index: {}]   ;;  %s567_s4 = inlined_call_operand.vmem [shape: f32[1,128], index: 4, kind: input, shape index: {}]   ;;  %s568_s5 = inlined_call_operand.hbm [shape: f32[8,128], index: 5, kind: output, shape index: {}]  }
   0x1   :  { %11 = vsyncpa [#allocation6], 0 }
   0x2   :  { %12 = vsyncpa [#allocation4], 0  ;;  %s464_s18 = smov [#allocation5]   ;;  %s370_s22 = scalar_lea.hbm %s564_s1, 512 }
   0x3   :  { %s28_s19 = sshll.u32 %s464_s18, 4  ;;  %p371_p0 = scmp.ne.s32.totalorder %s564_s1, %s370_s22  ;;  %s29_s19 = int_to_ptr.vmem [resolvable:$true] %s28_s19 }
   0x4   :  { %p374_p1 = scmp.lt.u32.totalorder %s370_s22, %s564_s1 }
   0x6   :  { %p376_p2 = pnand %p374_p1, %p371_p0 }
   0x8   :  { %379 = shalt.err (!%p376_p2)
}
   0x9   :  { %s380_s27 = scalar_lea.vmem %s29_s19, 512  ;;  %p385_p4 = scmp.lt.s32.totalorder %s29_s19, %s29_s19 }
   0xa   :  { %p381_p3 = scmp.ne.s32.totalorder %s29_s19, %s380_s27  ;;  %p386_p5 = scmp.lt.s32.totalorder %s380_s27, %s380_s27 }
   0xc   :  { %p387_p6 = por %p386_p5, %p385_p4 }
   0xe   :  { %p388_p7 = pnand %p387_p6, %p381_p3 }
  0x10   :  { %391 = shalt.err (!%p388_p7)
}
  0x11   :  { %s465_s28 = smov 128   ;;  %s466_s29 = smov 8  }
  0x12   :  { %34 = dma.hbm_to_vmem [thread:$0]  %s564_s1, 512, %s29_s19, [#allocation6], %s465_s28, %s465_s28, %s466_s29  }
  0x13   :  { %s467_s7 = smov [#allocation2]   ;;  %s468_s9 = smov [#allocation7]  }
  0x14   :  { %s19_s8 = sshll.u32 %s467_s7, 4  ;;  %s42_s10 = sshll.u32 %s468_s9, 4  ;;  %s20_s8 = int_to_ptr.vmem [resolvable:$true] %s19_s8  ;;  %s43_s10 = int_to_ptr.vmem [resolvable:$true] %s42_s10 }
  0x15   :  { %s392_s13 = scalar_lea.hbm %s563_s0, 128 }
  0x16   :  { %p393_p8 = scmp.ne.s32.totalorder %s563_s0, %s392_s13  ;;  %p396_p9 = scmp.lt.u32.totalorder %s392_s13, %s563_s0 }
  0x18   :  { %p398_p10 = pnand %p396_p9, %p393_p8 }
  0x1a   :  { %401 = shalt.err (!%p398_p10)
}
  0x1b   :  { %s402_s1 = scalar_lea.vmem %s20_s8, 128  ;;  %p407_p12 = scmp.lt.s32.totalorder %s20_s8, %s20_s8 }
  0x1c   :  { %p403_p11 = scmp.ne.s32.totalorder %s20_s8, %s402_s1  ;;  %p408_p13 = scmp.lt.s32.totalorder %s402_s1, %s402_s1 }
  0x1e   :  { %p409_p0 = por %p408_p13, %p407_p12 }
  0x20   :  { %p410_p1 = pnand %p409_p0, %p403_p11 }
  0x22   :  { %413 = shalt.err (!%p410_p1)
}
  0x23   :  { %22 = dma.hbm_to_vmem [thread:$0]  %s563_s0, 128, %s20_s8, [#allocation3]  }
  0x24   :  { %s414_s22 = scalar_lea.hbm %s566_s3, 2048 }
  0x25   :  { %p415_p2 = scmp.ne.s32.totalorder %s566_s3, %s414_s22  ;;  %p418_p3 = scmp.lt.u32.totalorder %s414_s22, %s566_s3 }
  0x27   :  { %p420_p4 = pnand %p418_p3, %p415_p2 }
  0x29   :  { %423 = shalt.err (!%p420_p4)
}
  0x2a   :  { %s424_s27 = scalar_lea.vmem %s43_s10, 2048  ;;  %p429_p6 = scmp.lt.s32.totalorder %s43_s10, %s43_s10 }
  0x2b   :  { %p425_p5 = scmp.ne.s32.totalorder %s43_s10, %s424_s27  ;;  %p430_p7 = scmp.lt.s32.totalorder %s424_s27, %s424_s27 }
  0x2d   :  { %p431_p8 = por %p430_p7, %p429_p6 }
  0x2f   :  { %p432_p9 = pnand %p431_p8, %p425_p5 }
  0x31   :  { %435 = shalt.err (!%p432_p9)
}
  0x32   :  { %48 = dma.hbm_to_vmem [thread:$0]  %s566_s3, 2048, %s43_s10, [#allocation6], %s465_s28, %s465_s28, %s466_s29  }
  0x33   :  { %458 = dma.done.wait [#allocation3], 128  }
  0x34   :  { %459 = vsyncadd [#allocation3], 4294967168 }
  0x35   :  { %460 = dma.done.wait [#allocation6], 2560  }
  0x36   :  { %461 = vsyncadd [#allocation6], 4294964736  ;;  %v469_v0 = vmov 0.0|0.0   ;;  %vm470_vm0 = vmmov 0   ;;  %v471_v1 = vmov 0.0   ;;  %v61_v2 = vld [vmem:[#allocation5] sm:$0xff] }
  0x37   :  { %329 = vmatprep.subr.bf16.mxu0 %v469_v0  ;;  %291 = vmatprep.mubr.msk.f32.mxu0 %vm470_vm0, %v471_v1  ;;  %v62_v3 = vld [vmem:[#allocation5 + $0x8] sm:$0xff]  ;;  %v63_v4 = vld [vmem:[#allocation5 + $0x10] sm:$0xff]  ;;  %v64_v6 = vld [vmem:[#allocation5 + $0x18] sm:$0xff]  ;;  %vm72_vm1 = vcmask 261120   ;;  %s472_s7 = smov [#allocation8]  }
  0x38   :  { %335 = vmatprep.subr.bf16.mxu1 %v469_v0  ;;  %326 = vmatprep.mubr.msk.f32.mxu1 %vm470_vm0, %v471_v1  ;;  %v330_v5 = vpack.c.bf16 %v62_v3, %v61_v2  ;;  %v147_v7 = vld [vmem:[#allocation7] sm:$0xff]  ;;  %v148_v8 = vld [vmem:[#allocation7 + $0x8] sm:$0xff]  ;;  %v149_v9 = vld [vmem:[#allocation7 + $0x10] sm:$0xff]  ;;  %v333_v11 = vpack.c.bf16 %v64_v6, %v63_v4  ;;  %s248_s8 = sshll.u32 %s472_s7, 4  ;;  %s249_s8 = int_to_ptr.vmem [resolvable:$true] %s248_s8 }
  0x39   :  { %v150_v10 = vld [vmem:[#allocation7 + $0x18] sm:$0xff]  ;;  %v336_v12 = vpack.c.bf16 %v148_v8, %v147_v7  ;;  %v151_v14 = vld [vmem:[#allocation7 + $0x20] sm:$0xff]  ;;  %v152_v15 = vld [vmem:[#allocation7 + $0x28] sm:$0xff]  ;;  %s436_s9 = scalar_lea.vmem %s249_s8, 128  ;;  %p441_p11 = scmp.lt.s32.totalorder %s249_s8, %s249_s8 }
  0x3a   :  { %331 = vmatpush3.bf16.msra.mxu0 %v330_v5  ;;  %v339_v13 = vpack.c.bf16 %v150_v10, %v149_v9  ;;  %v60_v16 = vld [vmem:[#allocation2] sm:$0xff]  ;;  %v342_v17 = vpack.c.bf16 %v152_v15, %v151_v14  ;;  %v153_v18 = vld [vmem:[#allocation7 + $0x30] sm:$0xff]  ;;  %v155_v21 = vld [vmem:[#allocation7 + $0x40] sm:$0xff]  ;;  %p437_p10 = scmp.ne.s32.totalorder %s249_s8, %s436_s9  ;;  %p442_p12 = scmp.lt.s32.totalorder %s436_s9, %s436_s9 }
  0x3b   :  { %332 = vmatprep.subr.bf16.mxu0 %v469_v0  ;;  %337 = vmatpush3.bf16.msra.mxu1 %v336_v12  ;;  %v154_v19 = vld [vmem:[#allocation7 + $0x38] sm:$0xff]  ;;  %v156_v22 = vld [vmem:[#allocation7 + $0x48] sm:$0xff]  ;;  %v157_v24 = vld [vmem:[#allocation7 + $0x50] sm:$0xff] }
  0x3c   :  { %338 = vmatprep.subr.bf16.mxu1 %v469_v0  ;;  %v345_v20 = vpack.c.bf16 %v154_v19, %v153_v18  ;;  %v348_v23 = vpack.c.bf16 %v156_v22, %v155_v21  ;;  %v158_v25 = vld [vmem:[#allocation7 + $0x58] sm:$0xff]  ;;  %v159_v27 = vld [vmem:[#allocation7 + $0x60] sm:$0xff]  ;;  %v160_v28 = vld [vmem:[#allocation7 + $0x68] sm:$0xff]  ;;  %p443_p13 = por %p442_p12, %p441_p11 }
  0x3d   :  { %v351_v26 = vpack.c.bf16 %v158_v25, %v157_v24  ;;  %v354_v29 = vpack.c.bf16 %v160_v28, %v159_v27  ;;  %v161_v30 = vld [vmem:[#allocation7 + $0x70] sm:$0xff]  ;;  %v162_v31 = vld [vmem:[#allocation7 + $0x78] sm:$0xff] }
  0x3e   :  { %334 = vmatpush3.bf16.msra.mxu0 %v333_v11  ;;  %v357_v32 = vpack.c.bf16 %v162_v31, %v161_v30  ;;  %v258_v33 = vld [vmem:[%s565_s2] ss:$0 sm:$0xff]  ;;  %p444_p0 = pnand %p443_p13, %p437_p10 }
  0x3f   :  { %340 = vmatpush3.bf16.msra.mxu1 %v339_v13  ;;  %v260_v38 = vld [vmem:[%s567_s4] ss:$0 sm:$0xff] }
  0x40   :  { %341 = vmatprep.subr.bf16.mxu1 %v469_v0 }
  0x41   :  { %292 = vmatmul.mubr.msk.f32.vlgmr.msra.gmra.mrb[0].mxu0 %vm72_vm1, %v60_v16 }
  0x43   :  { %343 = vmatpush3.bf16.msra.mxu1 %v342_v17 }
  0x44   :  { %344 = vmatprep.subr.bf16.mxu1 %v469_v0 }
  0x47   :  { %346 = vmatpush3.bf16.msra.mxu1 %v345_v20 }
  0x48   :  { %347 = vmatprep.subr.bf16.mxu1 %v469_v0 }
  0x4b   :  { %349 = vmatpush3.bf16.msra.mxu1 %v348_v23 }
  0x4c   :  { %350 = vmatprep.subr.bf16.mxu1 %v469_v0 }
  0x4f   :  { %352 = vmatpush3.bf16.msra.mxu1 %v351_v26 }
  0x50   :  { %353 = vmatprep.subr.bf16.mxu1 %v469_v0 }
  0x53   :  { %355 = vmatpush3.bf16.msra.mxu1 %v354_v29 }
  0x54   :  { %356 = vmatprep.subr.bf16.mxu1 %v469_v0 }
  0x57   :  { %358 = vmatpush3.bf16.msra.mxu1 %v357_v32 }
 0x114   :  { %v142_v34 = vpop.f32.mrb[0].mxu0 }
 0x115   :  { %v143_v35 = vadd.f32 %v258_v33, %v142_v34  ;;  %v293_v36 = vpop.f32.mrb[1].mxu0 }
 0x117   :  { %v146_v37 = vmax.f32 %v143_v35, 0.0 }
 0x119   :  { %327 = vmatmul.mubr.f32.vlgmr.msra.gmra.mrb[0].mxu1 %v146_v37 }
 0x1ec   :  { %v236_v39 = vpop.f32.mrb[0].mxu1 }
 0x1ed   :  { %v237_v40 = vadd.f32 %v260_v38, %v236_v39  ;;  %v328_v41 = vpop.f32.mrb[1].mxu1 }
 0x1ef   :  { %368 = vtanh.f32 %v237_v40 }
 0x1f9   :  { %v369_v42 = vpop.eup %368 }
 0x1fa   :  { %241 = vst [vmem:[#allocation8] sm:$0xff] %v369_v42 }
 0x1fb   :  { %447 = shalt.err (!%p444_p0)
}
 0x1fc   :  { %s448_s4 = scalar_lea.hbm %s568_s5, 128 }
 0x1fd   :  { %p449_p1 = scmp.ne.s32.totalorder %s568_s5, %s448_s4  ;;  %p452_p2 = scmp.lt.u32.totalorder %s448_s4, %s568_s5 }
 0x1ff   :  { %p454_p3 = pnand %p452_p2, %p449_p1 }
 0x201   :  { %457 = shalt.err (!%p454_p3)
}
 0x202   :  { %251 = dma.vmem_to_hbm [thread:$0]  %s249_s8, 128, %s568_s5, [#allocation4]  }
 0x203   :  { %462 = dma.done.wait [#allocation4], 128  }
 0x204   :  { %463 = vsyncadd [#allocation4], 4294967168 }
 0x205   :  { %255 = vsyncpa [#allocation3], 1 }
 0x206   :  { %256 = vsyncpa [#allocation6], 1 }
 0x207   :  { %257 = vsyncpa [#allocation4], 1 }

</bundles_post_ra>
